<compile_context>
chip_gen: v7x
topology: tpu7x:2x2x1
jax: 0.10.0
libtpu: 0.0.40
codegen_flags: <defaults>
</compile_context>

<pallas_src>
import jax
import jax.numpy as jnp
from jax.experimental import pallas as pl
from jax.experimental.pallas import tpu as pltpu


def _round_up(n, m):
    return ((n + m - 1) // m) * m


def _cdiv(a, b):
    return (a + b - 1) // b


def _concat_fusion_kernel(x_ref, y_ref, wx_ref, wy_ref, b_ref, out_ref):
    """One (tm, tn) output tile, full K per step: out = x@Wx^T + y@Wy^T + b."""
    acc = jnp.dot(x_ref[...], wx_ref[...], preferred_element_type=jnp.float32)
    acc = acc + jnp.dot(y_ref[...], wy_ref[...],
                        preferred_element_type=jnp.float32)
    out_ref[...] = (acc + b_ref[...]).astype(out_ref.dtype)


def make_concat_fusion(weight, bias, dx, dy, *,
                       block_b=256, block_o=2048,
                       compute_dtype=jnp.bfloat16,
                       out_dtype=jnp.float32):
    """Build a ConcatFusion forward fn; weight prep happens exactly once.

    Args:
      weight: [O, dx + dy] float32 (PyTorch nn.Linear layout).
      bias:   [O] float32.
      dx, dy: feature dims of x and y (dx + dy == weight.shape[1]).

    Returns:
      forward(x, y) -> (x, y, concat([x, y], 1) @ weight.T + bias)
    """
    O, D = weight.shape
    assert dx + dy == D, "dx + dy must equal the Linear input_dim"

    # --- one-time weight / bias prep (split + transpose + pad + bf16 cast) ---
    dx_pad = _round_up(dx, 128)
    dy_pad = _round_up(dy, 128)
    o128 = _round_up(O, 128)
    nb_o = _cdiv(o128, block_o)
    tn = _round_up(_cdiv(o128, nb_o), 128)
    O_pad = nb_o * tn

    wx_t = (jnp.zeros((dx_pad, O_pad), jnp.float32)
            .at[:dx, :O].set(weight[:, :dx].T).astype(compute_dtype))
    wy_t = (jnp.zeros((dy_pad, O_pad), jnp.float32)
            .at[:dy, :O].set(weight[:, dx:].T).astype(compute_dtype))
    b2 = jnp.zeros((1, O_pad), jnp.float32).at[0, :O].set(bias)

    in_bytes = jnp.dtype(compute_dtype).itemsize

    @jax.jit
    def _fused(x, y):
        B = x.shape[0]
        assert x.shape[1] == dx and y.shape[1] == dy

        # --- batch tiling: >=2 blocks when possible, minimal zero padding ---
        b8 = _round_up(B, 8)
        nb_b = _cdiv(b8, min(block_b, b8))
        if nb_b < 2 and b8 >= 16:
            nb_b = 2                      # keep both v7x TensorCores busy
        tm = _round_up(_cdiv(b8, nb_b), 8)
        B_pad = nb_b * tm

        def prep(a, d, d_pad):
            a = a.astype(compute_dtype)
            if (B_pad, d_pad) != (B, d):
                a = jnp.pad(a, ((0, B_pad - B), (0, d_pad - d)))
            return a

        xb = prep(x, dx, dx_pad)
        yb = prep(y, dy, dy_pad)

        grid = (nb_o, nb_b)               # O outer (W streamed once), B inner

        # Accurate streaming estimate: x/y read nb_o times, W/bias once,
        # output written once.
        cost = pl.CostEstimate(
            flops=2 * B_pad * (dx_pad + dy_pad) * O_pad,
            transcendentals=0,
            bytes_accessed=(nb_o * B_pad * (dx_pad + dy_pad) * in_bytes
                            + (dx_pad + dy_pad) * O_pad * in_bytes
                            + O_pad * 4
                            + B_pad * O_pad * 4),
        )

        # Explicit scoped-VMEM budget (v5e default is only 16 MiB).
        footprint = (2 * tm * (dx_pad + dy_pad) * in_bytes      # x, y (dbl buf)
                     + 2 * (dx_pad + dy_pad) * tn * in_bytes    # Wx^T, Wy^T
                     + 2 * tn * 4                               # bias
                     + 2 * tm * tn * 4)                         # out (dbl buf)
        vmem_limit = min(max(int(footprint * 1.5) + (2 << 20), 16 << 20),
                         100 << 20)

        out_pad = pl.pallas_call(
            _concat_fusion_kernel,
            out_shape=jax.ShapeDtypeStruct((B_pad, O_pad), out_dtype),
            grid_spec=pltpu.PrefetchScalarGridSpec(
                num_scalar_prefetch=0,
                grid=grid,
                in_specs=[
                    pl.BlockSpec((tm, dx_pad), lambda j, i: (i, 0)),   # x
                    pl.BlockSpec((tm, dy_pad), lambda j, i: (i, 0)),   # y
                    pl.BlockSpec((dx_pad, tn), lambda j, i: (0, j)),   # Wx^T
                    pl.BlockSpec((dy_pad, tn), lambda j, i: (0, j)),   # Wy^T
                    pl.BlockSpec((1, tn), lambda j, i: (0, j)),        # bias
                ],
                out_specs=pl.BlockSpec((tm, tn), lambda j, i: (i, j)),
            ),
            compiler_params=pltpu.CompilerParams(
                dimension_semantics=("parallel", "parallel"),
                vmem_limit_bytes=vmem_limit,
            ),
            cost_estimate=cost,
        )(xb, yb, wx_t, wy_t, b2)

        return out_pad[:B, :O]

    def forward(x, y):
        return x, y, _fused(x, y)

    return forward


if __name__ == "__main__":
    # Small shapes consistent with the module: concat(x, y) feeds the Linear.
    B = 2
    Dx = 16
    Dy = 16
    input_dim = Dx + Dy          # 32
    output_dim = 100

    key = jax.random.PRNGKey(0)
    kx, ky, kw, kb = jax.random.split(key, 4)

    x = jax.random.normal(kx, (B, Dx), dtype=jnp.float32)
    y = jax.random.normal(ky, (B, Dy), dtype=jnp.float32)

    # Deterministic nn.Linear-style init (uniform in +/- 1/sqrt(fan_in)).
    bound = 1.0 / jnp.sqrt(jnp.float32(input_dim))
    weight = jax.random.uniform(kw, (output_dim, input_dim),
                                minval=-bound, maxval=bound,
                                dtype=jnp.float32)
    bias = jax.random.uniform(kb, (output_dim,),
                              minval=-bound, maxval=bound,
                              dtype=jnp.float32)

    concat_fusion = make_concat_fusion(weight, bias, Dx, Dy)
    x_out, y_out, out = concat_fusion(x, y)
    jax.block_until_ready(out)

    # Reference check against plain JAX (same math as the PyTorch module).
    # Tolerance accounts for the bf16 MXU data path (f32 accumulation).
    ref = jnp.concatenate([x, y], axis=1) @ weight.T + bias
    assert out.shape == (B, output_dim)
    assert out.dtype == jnp.float32
    assert jnp.allclose(out, ref, atol=3e-2, rtol=3e-2), (
        float(jnp.max(jnp.abs(out - ref))))
    assert (x_out is x) and (y_out is y)   # pass-through outputs, as in forward()

    print("KERNEL_OK")
</pallas_src>

<mosaic_0001>
module attributes {stable_mosaic.version = 11 : i64} {
  func.func @_concat_fusion_kernel(%arg0: i32, %arg1: i32, %arg2: memref<8x128xbf16, #tpu.memory_space<vmem>>, %arg3: memref<8x128xbf16, #tpu.memory_space<vmem>>, %arg4: memref<128x128xbf16, #tpu.memory_space<vmem>>, %arg5: memref<128x128xbf16, #tpu.memory_space<vmem>>, %arg6: memref<1x128xf32, #tpu.memory_space<vmem>>, %arg7: memref<8x128xf32, #tpu.memory_space<vmem>>) attributes {dimension_semantics = [#tpu.dimension_semantics<parallel>, #tpu.dimension_semantics<parallel>], iteration_bounds = array<i64: 1, 1>, scalar_prefetch = 0 : i64, scratch_operands = 0 : i64, tpu.core_type = #tpu.core_type<tc>, window_params = [{transform_indices = @transform_0, window_bounds = array<i64: 8, 128>}, {transform_indices = @transform_1, window_bounds = array<i64: 8, 128>}, {transform_indices = @transform_2, window_bounds = array<i64: 128, 128>}, {transform_indices = @transform_3, window_bounds = array<i64: 128, 128>}, {transform_indices = @transform_4, window_bounds = array<i64: 1, 128>}, {transform_indices = @transform_5, window_bounds = array<i64: 8, 128>}]} {
    %c0 = arith.constant 0 : index
    %c0_0 = arith.constant 0 : index
    %0 = vector.load %arg2[%c0, %c0_0] : memref<8x128xbf16, #tpu.memory_space<vmem>>, vector<8x128xbf16>
    %c0_1 = arith.constant 0 : index
    %c0_2 = arith.constant 0 : index
    %1 = vector.load %arg4[%c0_1, %c0_2] : memref<128x128xbf16, #tpu.memory_space<vmem>>, vector<128x128xbf16>
    %cst = arith.constant dense<0.000000e+00> : vector<8x128xf32>
    %2 = tpu.matmul %0, %1, %cst {dimension_numbers = #tpu.dot_dimension_numbers<[1], [0], [0], [1], [0, 0, 1, 1], [], []>} : vector<8x128xbf16>, vector<128x128xbf16>, vector<8x128xf32> -> vector<8x128xf32>
    %c0_3 = arith.constant 0 : index
    %c0_4 = arith.constant 0 : index
    %3 = vector.load %arg3[%c0_3, %c0_4] : memref<8x128xbf16, #tpu.memory_space<vmem>>, vector<8x128xbf16>
    %c0_5 = arith.constant 0 : index
    %c0_6 = arith.constant 0 : index
    %4 = vector.load %arg5[%c0_5, %c0_6] : memref<128x128xbf16, #tpu.memory_space<vmem>>, vector<128x128xbf16>
    %cst_7 = arith.constant dense<0.000000e+00> : vector<8x128xf32>
    %5 = tpu.matmul %3, %4, %cst_7 {dimension_numbers = #tpu.dot_dimension_numbers<[1], [0], [0], [1], [0, 0, 1, 1], [], []>} : vector<8x128xbf16>, vector<128x128xbf16>, vector<8x128xf32> -> vector<8x128xf32>
    %6 = arith.addf %2, %5 : vector<8x128xf32>
    %c0_8 = arith.constant 0 : index
    %c0_9 = arith.constant 0 : index
    %7 = vector.load %arg6[%c0_8, %c0_9] : memref<1x128xf32, #tpu.memory_space<vmem>>, vector<1x128xf32>
    %8 = vector.broadcast %7 : vector<1x128xf32> to vector<8x128xf32>
    %9 = arith.addf %6, %8 : vector<8x128xf32>
    %c0_10 = arith.constant 0 : index
    %c0_11 = arith.constant 0 : index
    %10 = vector.load %arg7[%c0_10, %c0_11] : memref<8x128xf32, #tpu.memory_space<vmem>>, vector<8x128xf32>
    tpu.vector_store %arg7[%c0_10, %c0_11], %9 {strides = array<i32>} : memref<8x128xf32, #tpu.memory_space<vmem>>, vector<8x128xf32>,
    return
  }
  func.func @transform_0(%arg0: i32, %arg1: i32) -> (i32, i32) {
    %c0_i32 = arith.constant 0 : i32
    %c0_i32_0 = arith.constant 0 : i32
    return %arg1, %c0_i32 : i32, i32
  }
  func.func @transform_1(%arg0: i32, %arg1: i32) -> (i32, i32) {
    %c0_i32 = arith.constant 0 : i32
    %c0_i32_0 = arith.constant 0 : i32
    return %arg1, %c0_i32 : i32, i32
  }
  func.func @transform_2(%arg0: i32, %arg1: i32) -> (i32, i32) {
    %c0_i32 = arith.constant 0 : i32
    %c0_i32_0 = arith.constant 0 : i32
    return %c0_i32, %arg0 : i32, i32
  }
  func.func @transform_3(%arg0: i32, %arg1: i32) -> (i32, i32) {
    %c0_i32 = arith.constant 0 : i32
    %c0_i32_0 = arith.constant 0 : i32
    return %c0_i32, %arg0 : i32, i32
  }
  func.func @transform_4(%arg0: i32, %arg1: i32) -> (i32, i32) {
    %c0_i32 = arith.constant 0 : i32
    %c0_i32_0 = arith.constant 0 : i32
    return %c0_i32, %arg0 : i32, i32
  }
  func.func @transform_5(%arg0: i32, %arg1: i32) -> (i32, i32) {
    %c0_i32 = arith.constant 0 : i32
    return %arg1, %arg0 : i32, i32
  }
}

</mosaic_0001>

<bundles_post_ra>
// kernel: _fused.1
= control target key start
LH: loop header
LB: loop body
LE: loop exit
PB: predicated region body
PF: predicated region fallthrough
CT: control target
= control target key end

     0   :  { %10 = vsyncpa [#allocation3], 0  ;;  %s491_s0 = inlined_call_operand.vmem [shape: bf16[8,128], index: 0, kind: input, shape index: {}]   ;;  %s492_s1 = inlined_call_operand.vmem [shape: bf16[8,128], index: 1, kind: input, shape index: {}]   ;;  %s493_s2 = inlined_call_operand.hbm [shape: bf16[128,128], index: 2, kind: input, shape index: {}]   ;;  %s494_s3 = inlined_call_operand.hbm [shape: bf16[128,128], index: 3, kind: input, shape index: {}]   ;;  %s495_s4 = inlined_call_operand.vmem [shape: f32[1,128], index: 4, kind: input, shape index: {}]   ;;  %s496_s5 = inlined_call_operand.vmem [shape: f32[8,128], index: 5, kind: output, shape index: {}]  }
   0x1   :  { %11 = vsyncpa [#allocation5], 0  ;;  %s419_s18 = smov [#allocation2]   ;;  %s371_s22 = scalar_lea.hbm %s493_s2, 1024 }
   0x2   :  { %s21_s19 = sshll.u32 %s419_s18, 4  ;;  %p372_p0 = scmp.ne.s32.totalorder %s493_s2, %s371_s22  ;;  %s22_s19 = int_to_ptr.vmem [resolvable:$true] %s21_s19 }
   0x3   :  { %p375_p1 = scmp.lt.u32.totalorder %s371_s22, %s493_s2 }
   0x5   :  { %p377_p2 = pnand %p375_p1, %p372_p0 }
   0x7   :  { %380 = shalt.err (!%p377_p2)
}
   0x8   :  { %s381_s27 = scalar_lea.vmem %s22_s19, 1024  ;;  %p386_p4 = scmp.lt.s32.totalorder %s22_s19, %s22_s19 }
   0x9   :  { %p382_p3 = scmp.ne.s32.totalorder %s22_s19, %s381_s27  ;;  %p387_p5 = scmp.lt.s32.totalorder %s381_s27, %s381_s27 }
   0xb   :  { %p388_p6 = por %p387_p5, %p386_p4 }
   0xd   :  { %p389_p7 = pnand %p388_p6, %p382_p3 }
   0xf   :  { %392 = shalt.err (!%p389_p7)
}
  0x10   :  { %s420_s28 = smov 64   ;;  %s421_s29 = smov 4  }
  0x11   :  { %27 = dma.hbm_to_vmem [thread:$0]  %s493_s2, 1024, %s22_s19, [#allocation3], %s420_s28, %s420_s28, %s421_s29  }
  0x12   :  { %s422_s7 = smov [#allocation4]   ;;  %s393_s11 = scalar_lea.hbm %s494_s3, 1024 }
  0x13   :  { %s33_s8 = sshll.u32 %s422_s7, 4  ;;  %p394_p8 = scmp.ne.s32.totalorder %s494_s3, %s393_s11  ;;  %s34_s8 = int_to_ptr.vmem [resolvable:$true] %s33_s8 }
  0x14   :  { %p397_p9 = scmp.lt.u32.totalorder %s393_s11, %s494_s3 }
  0x16   :  { %p399_p10 = pnand %p397_p9, %p394_p8 }
  0x18   :  { %402 = shalt.err (!%p399_p10)
}
  0x19   :  { %s403_s16 = scalar_lea.vmem %s34_s8, 1024  ;;  %p408_p12 = scmp.lt.s32.totalorder %s34_s8, %s34_s8 }
  0x1a   :  { %p404_p11 = scmp.ne.s32.totalorder %s34_s8, %s403_s16  ;;  %p409_p13 = scmp.lt.s32.totalorder %s403_s16, %s403_s16 }
  0x1c   :  { %p410_p0 = por %p409_p13, %p408_p12 }
  0x1e   :  { %p411_p1 = pnand %p410_p0, %p404_p11 }
  0x20   :  { %414 = shalt.err (!%p411_p1)
}
  0x21   :  { %39 = dma.hbm_to_vmem [thread:$0]  %s494_s3, 1024, %s34_s8, [#allocation5], %s420_s28, %s420_s28, %s421_s29  }
  0x22   :  { %415 = dma.done.wait [#allocation3], 1024  }
  0x23   :  { %416 = vsyncadd [#allocation3], 4294966272 }
  0x24   :  { %417 = dma.done.wait [#allocation5], 1024  }
  0x25   :  { %418 = vsyncadd [#allocation5], 4294966272  ;;  %v423_v0 = vmov 0.0   ;;  %vm424_vm0 = vmmov 0   ;;  %v355_v1 = vld [vmem:[#allocation4] sm:$0xff]   ;;  %v357_v3 = vld [vmem:[#allocation4 + $0x8] sm:$0xff]  }
  0x26   :  { %309 = vmatprep.subr.bf16.mxu0 %v423_v0  ;;  %329 = vmatprep.subr.bf16.mxu1 %v423_v0  ;;  %v356_v2 = vld [vmem:[#allocation2] sm:$0xff]   ;;  %v358_v4 = vld [vmem:[#allocation2 + $0x8] sm:$0xff]   ;;  %v359_v5 = vld [vmem:[#allocation4 + $0x10] sm:$0xff]  }
  0x27   :  { %325 = vmatprep.mubr.msk.bf16.mxu0 %vm424_vm0, %v423_v0  ;;  %345 = vmatprep.mubr.msk.bf16.mxu1 %vm424_vm0, %v423_v0  ;;  %v360_v6 = vld [vmem:[#allocation2 + $0x10] sm:$0xff]   ;;  %v361_v7 = vld [vmem:[#allocation4 + $0x18] sm:$0xff]   ;;  %v363_v9 = vld [vmem:[#allocation4 + $0x20] sm:$0xff]  }
  0x28   :  { %310 = vmatpush3.bf16.msra.mxu0 %v355_v1  ;;  %330 = vmatpush3.bf16.msra.mxu1 %v356_v2  ;;  %v362_v8 = vld [vmem:[#allocation2 + $0x18] sm:$0xff]   ;;  %v364_v10 = vld [vmem:[#allocation2 + $0x20] sm:$0xff]   ;;  %v365_v11 = vld [vmem:[#allocation4 + $0x28] sm:$0xff]  }
  0x29   :  { %311 = vmatprep.subr.bf16.mxu0 %v423_v0  ;;  %331 = vmatprep.subr.bf16.mxu1 %v423_v0  ;;  %v366_v12 = vld [vmem:[#allocation2 + $0x28] sm:$0xff]   ;;  %v367_v13 = vld [vmem:[#allocation4 + $0x30] sm:$0xff]   ;;  %v369_v15 = vld [vmem:[#allocation4 + $0x38] sm:$0xff]  }
  0x2a   :  { %v368_v14 = vld [vmem:[#allocation2 + $0x30] sm:$0xff]   ;;  %v370_v16 = vld [vmem:[#allocation2 + $0x38] sm:$0xff]   ;;  %v66_v17 = vld [vmem:[%s492_s1] sm:$0xf] }
  0x2b   :  { %v49_v18 = vld [vmem:[%s491_s0] sm:$0xf] }
  0x2c   :  { %312 = vmatpush3.bf16.msra.mxu0 %v357_v3  ;;  %332 = vmatpush3.bf16.msra.mxu1 %v358_v4  ;;  %v290_v21 = vld [vmem:[%s495_s4] ss:$0 sm:$0xff] }
  0x2d   :  { %313 = vmatprep.subr.bf16.mxu0 %v423_v0  ;;  %333 = vmatprep.subr.bf16.mxu1 %v423_v0 }
  0x30   :  { %314 = vmatpush3.bf16.msra.mxu0 %v359_v5  ;;  %334 = vmatpush3.bf16.msra.mxu1 %v360_v6 }
  0x31   :  { %315 = vmatprep.subr.bf16.mxu0 %v423_v0  ;;  %335 = vmatprep.subr.bf16.mxu1 %v423_v0 }
  0x34   :  { %316 = vmatpush3.bf16.msra.mxu0 %v361_v7  ;;  %336 = vmatpush3.bf16.msra.mxu1 %v362_v8 }
  0x35   :  { %317 = vmatprep.subr.bf16.mxu0 %v423_v0  ;;  %337 = vmatprep.subr.bf16.mxu1 %v423_v0 }
  0x38   :  { %318 = vmatpush3.bf16.msra.mxu0 %v363_v9  ;;  %338 = vmatpush3.bf16.msra.mxu1 %v364_v10 }
  0x39   :  { %319 = vmatprep.subr.bf16.mxu0 %v423_v0  ;;  %339 = vmatprep.subr.bf16.mxu1 %v423_v0 }
  0x3c   :  { %320 = vmatpush3.bf16.msra.mxu0 %v365_v11  ;;  %340 = vmatpush3.bf16.msra.mxu1 %v366_v12 }
  0x3d   :  { %321 = vmatprep.subr.bf16.mxu0 %v423_v0  ;;  %341 = vmatprep.subr.bf16.mxu1 %v423_v0 }
  0x40   :  { %322 = vmatpush3.bf16.msra.mxu0 %v367_v13  ;;  %342 = vmatpush3.bf16.msra.mxu1 %v368_v14 }
  0x41   :  { %323 = vmatprep.subr.bf16.mxu0 %v423_v0  ;;  %343 = vmatprep.subr.bf16.mxu1 %v423_v0 }
  0x44   :  { %324 = vmatpush3.bf16.msra.mxu0 %v369_v15  ;;  %344 = vmatpush3.bf16.msra.mxu1 %v370_v16 }
  0x47   :  { %326 = vmatmul.mubr.bf16.vlgmr.msra.gmra.mrb[0].mxu0 %v66_v17  ;;  %346 = vmatmul.mubr.bf16.vlgmr.msra.gmra.mrb[0].mxu1 %v49_v18 }
 0x11a   :  { %v165_v19 = vpop.f32.mrb[0].mxu0  ;;  %v253_v20 = vpop.f32.mrb[0].mxu1 }
 0x11b   :  { %v327_v22 = vpop.f32.mrb[1].mxu0  ;;  %v254_v23 = vadd.f32 %v253_v20, %v165_v19  ;;  %v347_v24 = vpop.f32.mrb[1].mxu1 }
 0x11c   :  { %v168_v25 = vpop.f32.mrb[2].mxu0  ;;  %v256_v26 = vpop.f32.mrb[2].mxu1 }
 0x11d   :  { %v328_v27 = vpop.f32.mrb[3].mxu0  ;;  %v266_v28 = vadd.f32 %v290_v21, %v254_v23  ;;  %v348_v29 = vpop.f32.mrb[3].mxu1 }
 0x11f   :  { %267 = vst [vmem:[%s496_s5] sm:$0xff] %v266_v28 }
 0x120   :  { %272 = vsyncpa [#allocation3], 1 }
 0x121   :  { %273 = vsyncpa [#allocation5], 1 }

</bundles_post_ra>
